<compile_context>
chip_gen: v7x
topology: tpu7x:2x2x1
jax: 0.10.0
libtpu: 0.0.40
codegen_flags: <defaults>
</compile_context>

<pallas_src>
import math

import jax
import jax.numpy as jnp
from jax.experimental import pallas as pl
from jax.experimental.pallas import tpu as pltpu


_TARGET_TILE_BYTES = 2 * 1024 * 1024   # per-operand block target; x / out / pe are each
                                       # double-buffered -> <= ~12 MiB VMEM in flight.
_VMEM_LIMIT_BYTES = 32 * 1024 * 1024   # above v5e's 16 MiB default, within v7x physical.


def _build_pe_table(d_model, max_len=5000, dtype=jnp.float32):
    """Sinusoidal positional-encoding table, shape (max_len, d_model)."""
    position = jnp.arange(0, max_len, dtype=jnp.float32)[:, None]             # (L, 1)
    div_term = jnp.exp(
        jnp.arange(0, d_model, 2, dtype=jnp.float32) * (-math.log(10000.0) / d_model)
    )                                                                          # (ceil(D/2),)
    sin_part = jnp.sin(position * div_term)                                    # (L, ceil(D/2))
    cos_part = jnp.cos(position * div_term)[:, : d_model // 2]                 # (L, floor(D/2))
    pe = jnp.zeros((max_len, d_model), dtype=jnp.float32)
    pe = pe.at[:, 0::2].set(sin_part)
    pe = pe.at[:, 1::2].set(cos_part)
    return pe.astype(dtype)


def _pe_add_kernel(x_ref, pe_ref, o_ref):
    # x_ref / o_ref: (TILE_B, TILE_R, LANE); pe_ref: (TILE_R, LANE) broadcast over batch.
    o_ref[...] = x_ref[...] + pe_ref[...]


def _pick_lane(per_batch_elems, table_elems):
    """Largest lane width (multiple of 128) dividing S*D; prefer one that also
    divides the full pe table so it can be windowed without a wrapper-side copy."""
    for lane in (1024, 512, 256, 128):
        if per_batch_elems % lane == 0 and table_elems % lane == 0:
            return lane
    for lane in (1024, 512, 256, 128):
        if per_batch_elems % lane == 0:
            return lane
    return None


def positional_encoding_forward(x, pe_table):
    """x: (B, S, D); pe_table: (max_len, D).  Returns x + pe_table[None, :S, :]."""
    B, S, D = x.shape
    max_len, Dt = pe_table.shape
    assert Dt == D and S <= max_len

    if pe_table.dtype != x.dtype:
        pe_table = pe_table.astype(x.dtype)

    itemsize = x.dtype.itemsize
    sub = 8 * max(1, 4 // itemsize)          # sublane multiple: 8 f32, 16 bf16, 32 int8

    lane = _pick_lane(S * D, max_len * D)
    if lane is None:
        # S*D not a multiple of 128: keep (S, D) layout (full-extent block is legal).
        lane, rows = D, S
        x_v = x
    else:
        rows = (S * D) // lane
        x_v = x.reshape(B, rows, lane)       # contiguous row-major reshape: free

    # Tile sizing: aim at ~_TARGET_TILE_BYTES per block (VMEM sublane padding included).
    target_rows = max(sub, _TARGET_TILE_BYTES // (lane * itemsize))
    if rows > target_rows:
        tile_r = max(sub, (target_rows // sub) * sub)
        tile_b = 1
    else:
        tile_r = rows
        padded_rows = ((rows + sub - 1) // sub) * sub
        tile_b = int(max(1, min(B, target_rows // padded_rows)))

    # pe operand: window the full (reshaped) table via BlockSpec when the block
    # alignment rules allow it; otherwise materialize exactly the rows needed.
    if tile_r % sub == 0 and lane % 128 == 0 and (max_len * D) % lane == 0:
        pe_v = pe_table.reshape((max_len * D) // lane, lane)   # free reshape, no copy
    else:
        pe_v = pe_table[:S, :].reshape(rows, lane)             # small one-off copy

    n_r = pl.cdiv(rows, tile_r)
    n_b = pl.cdiv(B, tile_b)

    out = pl.pallas_call(
        _pe_add_kernel,
        out_shape=jax.ShapeDtypeStruct((B, rows, lane), x.dtype),
        grid_spec=pltpu.PrefetchScalarGridSpec(
            num_scalar_prefetch=0,
            # row-blocks outermost, batch-blocks innermost: the pe block index is
            # constant across the inner axis so it is fetched once per row-block.
            grid=(n_r, n_b),
            in_specs=[
                pl.BlockSpec((tile_b, tile_r, lane), lambda r, b: (b, r, 0)),
                pl.BlockSpec((tile_r, lane), lambda r, b: (r, 0)),
            ],
            out_specs=pl.BlockSpec((tile_b, tile_r, lane), lambda r, b: (b, r, 0)),
        ),
        compiler_params=pltpu.CompilerParams(
            dimension_semantics=("parallel", "parallel"),
            vmem_limit_bytes=_VMEM_LIMIT_BYTES,
        ),
    )(x_v, pe_v)

    return out.reshape(B, S, D)


if __name__ == "__main__":
    max_len = 5000
    key = jax.random.PRNGKey(0)

    # Primary small shapes consistent with the module: batch=2, seq=8, d_model=32.
    B, S, D = 2, 8, 32
    x = jax.random.normal(key, (B, S, D), dtype=jnp.float32)
    pe_table = _build_pe_table(D, max_len)

    out = positional_encoding_forward(x, pe_table)
    out = jax.block_until_ready(out)
    ref = x + pe_table[None, :S, :]
    assert out.shape == (B, S, D)
    assert jnp.allclose(out, ref, atol=1e-6, rtol=1e-6), "mismatch vs reference (main)"

    # Secondary check: exercises the non-128-divisible fallback layout.
    B2, S2, D2 = 2, 6, 20
    x2 = jax.random.normal(jax.random.PRNGKey(0), (B2, S2, D2), dtype=jnp.float32)
    pe2 = _build_pe_table(D2, max_len)
    out2 = jax.block_until_ready(positional_encoding_forward(x2, pe2))
    ref2 = x2 + pe2[None, :S2, :]
    assert jnp.allclose(out2, ref2, atol=1e-6, rtol=1e-6), "mismatch vs reference (fallback)"

    # Tertiary check: larger shape that exercises multi-block tiling and the
    # zero-copy windowing of the full pe table (S*D and max_len*D both lane-aligned).
    B3, S3, D3 = 4, 640, 128
    x3 = jax.random.normal(jax.random.PRNGKey(0), (B3, S3, D3), dtype=jnp.float32)
    pe3 = _build_pe_table(D3, max_len)
    out3 = jax.block_until_ready(positional_encoding_forward(x3, pe3))
    ref3 = x3 + pe3[None, :S3, :]
    assert jnp.allclose(out3, ref3, atol=1e-6, rtol=1e-6), "mismatch vs reference (tiled)"

    print("KERNEL_OK")
</pallas_src>

<mosaic_0001>
module attributes {stable_mosaic.version = 11 : i64} {
  func.func @_pe_add_kernel(%arg0: i32, %arg1: i32, %arg2: memref<2x1x256xf32, #tpu.memory_space<vmem>>, %arg3: memref<1x256xf32, #tpu.memory_space<vmem>>, %arg4: memref<2x1x256xf32, #tpu.memory_space<vmem>>) attributes {dimension_semantics = [#tpu.dimension_semantics<parallel>, #tpu.dimension_semantics<parallel>], iteration_bounds = array<i64: 1, 1>, scalar_prefetch = 0 : i64, scratch_operands = 0 : i64, tpu.core_type = #tpu.core_type<tc>, window_params = [{transform_indices = @transform_0, window_bounds = array<i64: 2, 1, 256>}, {transform_indices = @transform_1, window_bounds = array<i64: 1, 256>}, {transform_indices = @transform_2, window_bounds = array<i64: 2, 1, 256>}]} {
    %c0 = arith.constant 0 : index
    %c0_0 = arith.constant 0 : index
    %c0_1 = arith.constant 0 : index
    %0 = vector.load %arg2[%c0, %c0_0, %c0_1] : memref<2x1x256xf32, #tpu.memory_space<vmem>>, vector<2x1x256xf32>
    %c0_2 = arith.constant 0 : index
    %c0_3 = arith.constant 0 : index
    %1 = vector.load %arg3[%c0_2, %c0_3] : memref<1x256xf32, #tpu.memory_space<vmem>>, vector<1x256xf32>
    %2 = vector.shape_cast %1 : vector<1x256xf32> to vector<1x1x256xf32>
    %3 = vector.broadcast %2 : vector<1x1x256xf32> to vector<2x1x256xf32>
    %4 = arith.addf %0, %3 : vector<2x1x256xf32>
    %c0_4 = arith.constant 0 : index
    %c0_5 = arith.constant 0 : index
    %c0_6 = arith.constant 0 : index
    %5 = vector.load %arg4[%c0_4, %c0_5, %c0_6] : memref<2x1x256xf32, #tpu.memory_space<vmem>>, vector<2x1x256xf32>
    tpu.vector_store %arg4[%c0_4, %c0_5, %c0_6], %4 {strides = array<i32>} : memref<2x1x256xf32, #tpu.memory_space<vmem>>, vector<2x1x256xf32>,
    return
  }
  func.func @transform_0(%arg0: i32, %arg1: i32) -> (i32, i32, i32) {
    %c0_i32 = arith.constant 0 : i32
    %c0_i32_0 = arith.constant 0 : i32
    return %arg1, %arg0, %c0_i32 : i32, i32, i32
  }
  func.func @transform_1(%arg0: i32, %arg1: i32) -> (i32, i32) {
    %c0_i32 = arith.constant 0 : i32
    %c0_i32_0 = arith.constant 0 : i32
    return %arg0, %c0_i32 : i32, i32
  }
  func.func @transform_2(%arg0: i32, %arg1: i32) -> (i32, i32, i32) {
    %c0_i32 = arith.constant 0 : i32
    %c0_i32_0 = arith.constant 0 : i32
    return %arg1, %arg0, %c0_i32 : i32, i32, i32
  }
}

</mosaic_0001>

<bundles_post_ra>
// kernel: tpu_custom_call.1
= control target key start
LH: loop header
LB: loop body
LE: loop exit
PB: predicated region body
PF: predicated region fallthrough
CT: control target
= control target key end

     0   :  { %7 = vsyncpa [#allocation3], 0  ;;  %s158_s0 = inlined_call_operand.hbm [shape: f32[2,1,256], index: 0, kind: input, shape index: {}]   ;;  %s159_s1 = inlined_call_operand.vmem [shape: f32[1,256], index: 1, kind: input, shape index: {}]   ;;  %s160_s2 = inlined_call_operand.hbm [shape: f32[2,1,256], index: 2, kind: output, shape index: {}]  }
   0x1   :  { %8 = vsyncpa [#allocation4], 0  ;;  %s106_s9 = smov [#allocation2]   ;;  %s58_s13 = scalar_lea.hbm %s158_s0, 64 }
   0x2   :  { %s14_s10 = sshll.u32 %s106_s9, 4  ;;  %p59_p0 = scmp.ne.s32.totalorder %s158_s0, %s58_s13  ;;  %s15_s10 = int_to_ptr.vmem [resolvable:$true] %s14_s10 }
   0x3   :  { %p62_p1 = scmp.lt.u32.totalorder %s58_s13, %s158_s0 }
   0x5   :  { %p64_p2 = pnand %p62_p1, %p59_p0 }
   0x7   :  { %67 = shalt.err (!%p64_p2)
}
   0x8   :  { %s68_s18 = scalar_lea.vmem %s15_s10, 64  ;;  %p73_p4 = scmp.lt.s32.totalorder %s15_s10, %s15_s10 }
   0x9   :  { %p69_p3 = scmp.ne.s32.totalorder %s15_s10, %s68_s18  ;;  %p74_p5 = scmp.lt.s32.totalorder %s68_s18, %s68_s18 }
   0xb   :  { %p75_p6 = por %p74_p5, %p73_p4 }
   0xd   :  { %p76_p7 = pnand %p75_p6, %p69_p3 }
   0xf   :  { %79 = shalt.err (!%p76_p7)
}
  0x10   :  { %s107_s19 = smov 32   ;;  %s108_s20 = smov 2  }
  0x11   :  { %20 = dma.hbm_to_vmem [thread:$0]  %s158_s0, 64, %s15_s10, [#allocation3], %s107_s19, %s107_s19, %s108_s20  }
  0x12   :  { %102 = dma.done.wait [#allocation3], 64  }
  0x13   :  { %103 = vsyncadd [#allocation3], 4294967232  ;;  %v31_v0 = vlaneseq  ;;  %s109_s23 = smov [#allocation5]   ;;  %v26_v1 = vld [vmem:[#allocation2] sm:$0x3] }
  0x14   :  { %s42_s24 = sshll.u32 %s109_s23, 4  ;;  %v28_v2 = vld [vmem:[%s159_s1] sm:$0x3]  ;;  %v27_v3 = vld [vmem:[#allocation2 + $0x2] sm:$0x3]  ;;  %s43_s24 = int_to_ptr.vmem [resolvable:$true] %s42_s24 }
  0x15   :  { %vm33_vm0 = vcmp.lt.s32.totalorder %v31_v0, 256  ;;  %v29_v4 = vadd.f32 %v28_v2, %v26_v1  ;;  %v30_v5 = vadd.f32 %v28_v2, %v27_v3  ;;  %s80_s27 = scalar_lea.vmem %s43_s24, 64  ;;  %p85_p9 = scmp.lt.s32.totalorder %s43_s24, %s43_s24 }
  0x16   :  { %p81_p8 = scmp.ne.s32.totalorder %s43_s24, %s80_s27  ;;  %p86_p10 = scmp.lt.s32.totalorder %s80_s27, %s80_s27 }
  0x17   :  { %35 = vst.msk [vmem:[#allocation5] sm:$0x3] %vm33_vm0, %v29_v4  ;;  %36 = vst.msk [vmem:[#allocation5 + $0x2] sm:$0x3] %vm33_vm0, %v30_v5 }
  0x18   :  { %p87_p11 = por %p86_p10, %p85_p9 }
  0x1a   :  { %p88_p12 = pnand %p87_p11, %p81_p8 }
  0x1c   :  { %91 = shalt.err (!%p88_p12)
}
  0x1d   :  { %s92_s29 = scalar_lea.hbm %s160_s2, 64 }
  0x1e   :  { %p93_p13 = scmp.ne.s32.totalorder %s160_s2, %s92_s29  ;;  %p96_p0 = scmp.lt.u32.totalorder %s92_s29, %s160_s2 }
  0x20   :  { %p98_p1 = pnand %p96_p0, %p93_p13 }
  0x22   :  { %101 = shalt.err (!%p98_p1)
}
  0x23   :  { %48 = dma.vmem_to_hbm [thread:$0]  %s43_s24, 64, %s160_s2, [#allocation4], %s107_s19, %s107_s19, %s108_s20  }
  0x24   :  { %104 = dma.done.wait [#allocation4], 64  }
  0x25   :  { %105 = vsyncadd [#allocation4], 4294967232 }
  0x26   :  { %52 = vsyncpa [#allocation3], 1 }
  0x27   :  { %53 = vsyncpa [#allocation4], 1 }

</bundles_post_ra>
